<compile_context>
chip_gen: v5e
topology: v5e:2x2
jax: 0.10.0
libtpu: 0.0.40
codegen_flags: <defaults>
</compile_context>

<pallas_src>
import jax
import jax.numpy as jnp
from jax.experimental import pallas as pl
from jax.experimental.pallas import tpu as pltpu

D_IN, D_HID, D_BR, D_OUT = 10, 20, 15, 10


def branching_mlp_kernel(
    x_ref,
    w0_ref, b0_ref,      # initial_layer:               10 -> 20
    w12_ref, b12_ref,    # fused branch1||branch2:      20 -> 30
    w3_ref, b3_ref,      # post_combine_layer:          15 -> 10
    o_ref,
):
    x = x_ref[...]

    # initial layer
    h = jnp.dot(x, w0_ref[...], preferred_element_type=jnp.float32) + b0_ref[...]

    # fused branch matmul: one MXU pass for both branches
    z = jnp.dot(h, w12_ref[...], preferred_element_type=jnp.float32) + b12_ref[...]
    branch1 = jnp.maximum(z[:, :D_BR], 0.0)       # ReLU half
    branch2 = jax.nn.sigmoid(z[:, D_BR:])         # Sigmoid half
    combined = branch1 + branch2

    # post-combine layer
    out = jnp.dot(combined, w3_ref[...], preferred_element_type=jnp.float32) + b3_ref[...]
    o_ref[...] = out.astype(o_ref.dtype)


def branching_mlp(x, params, *, batch_tile=512):
    """Full branching-MLP forward in a single Pallas kernel.

    Batch is tiled over a 1-D grid (weights stay resident via constant
    index_maps); at small batch this degenerates to one grid step with the
    whole input as a single block.
    """
    (w0, b0, w1, b1, w2, b2, w3, b3) = params

    # Fuse the two branch layers into one wider matmul (done once per call in
    # the wrapper; XLA will constant-fold / hoist this under jit).
    w12 = jnp.concatenate([w1, w2], axis=1)   # (20, 30)
    b12 = jnp.concatenate([b1, b2], axis=1)   # (1, 30)

    batch = x.shape[0]
    if batch <= batch_tile:
        tb = batch                      # single step, block == full array
        padded_batch = batch
    else:
        tb = batch_tile                 # multiple of 8 -> valid sublane tiling
        padded_batch = -(-batch // tb) * tb
    x_in = x if padded_batch == batch else jnp.pad(
        x, ((0, padded_batch - batch), (0, 0)))
    grid = (padded_batch // tb,)

    def resident(arr):
        # Same block index every grid step -> parameter stays pinned in VMEM.
        return pl.BlockSpec(arr.shape, lambda i: (0, 0))

    out = pl.pallas_call(
        branching_mlp_kernel,
        out_shape=jax.ShapeDtypeStruct((padded_batch, D_OUT), jnp.float32),
        grid=grid,
        in_specs=[
            pl.BlockSpec((tb, D_IN), lambda i: (i, 0)),
            resident(w0), resident(b0),
            resident(w12), resident(b12),
            resident(w3), resident(b3),
        ],
        out_specs=pl.BlockSpec((tb, D_OUT), lambda i: (i, 0)),
        compiler_params=pltpu.CompilerParams(
            dimension_semantics=("parallel",)),   # uses both TCs on v7x
    )(x_in, w0, b0, w12, b12, w3, b3)

    return out[:batch] if padded_batch != batch else out


def init_params(key):
    """Deterministic PyTorch-style (Kaiming-uniform-ish) Linear init."""
    def linear(key, fan_in, fan_out):
        kw, kb = jax.random.split(key)
        bound = 1.0 / (fan_in ** 0.5)
        # Stored as (in_features, out_features) so the kernel does x @ W.
        w = jax.random.uniform(kw, (fan_in, fan_out), jnp.float32, -bound, bound)
        # Bias as (1, out_features) — 2-D keeps it lane-friendly on TPU.
        b = jax.random.uniform(kb, (1, fan_out), jnp.float32, -bound, bound)
        return w, b

    k0, k1, k2, k3 = jax.random.split(key, 4)
    w0, b0 = linear(k0, D_IN, D_HID)    # initial_layer
    w1, b1 = linear(k1, D_HID, D_BR)    # branch1_layer1
    w2, b2 = linear(k2, D_HID, D_BR)    # branch2_layer1
    w3, b3 = linear(k3, D_BR, D_OUT)    # post_combine_layer
    return (w0, b0, w1, b1, w2, b2, w3, b3)


def reference_forward(x, params):
    """Pure-JAX reference mirroring the PyTorch forward exactly."""
    (w0, b0, w1, b1, w2, b2, w3, b3) = params
    h = x @ w0 + b0
    branch1 = jax.nn.relu(h @ w1 + b1)
    branch2 = jax.nn.sigmoid(h @ w2 + b2)
    combined = branch1 + branch2
    return combined @ w3 + b3


if __name__ == "__main__":
    key = jax.random.PRNGKey(0)
    k_params, k_x = jax.random.split(key)

    params = init_params(k_params)
    # Module's forward implies (batch, 10) input; use a small batch of 8.
    x = jax.random.normal(k_x, (8, 10), dtype=jnp.float32)

    out = branching_mlp(x, params)
    out = jax.block_until_ready(out)

    ref = reference_forward(x, params)
    assert out.shape == (8, 10)
    assert jnp.allclose(out, ref, atol=1e-5, rtol=1e-5), "mismatch vs reference"

    print("KERNEL_OK")
</pallas_src>

<mosaic_0001>
module attributes {stable_mosaic.version = 11 : i64} {
  func.func @branching_mlp_kernel(%arg0: i32, %arg1: memref<8x10xf32, #tpu.memory_space<vmem>>, %arg2: memref<10x20xf32, #tpu.memory_space<vmem>>, %arg3: memref<1x20xf32, #tpu.memory_space<vmem>>, %arg4: memref<20x30xf32, #tpu.memory_space<vmem>>, %arg5: memref<1x30xf32, #tpu.memory_space<vmem>>, %arg6: memref<15x10xf32, #tpu.memory_space<vmem>>, %arg7: memref<1x10xf32, #tpu.memory_space<vmem>>, %arg8: memref<8x10xf32, #tpu.memory_space<vmem>>) attributes {dimension_semantics = [#tpu.dimension_semantics<parallel>], iteration_bounds = array<i64: 1>, scalar_prefetch = 0 : i64, scratch_operands = 0 : i64, tpu.core_type = #tpu.core_type<tc>, window_params = [{transform_indices = @transform_0, window_bounds = array<i64: 8, 10>}, {pipeline_mode = #tpu.pipeline_mode<synchronous>, transform_indices = @transform_1, window_bounds = array<i64: 10, 20>}, {pipeline_mode = #tpu.pipeline_mode<synchronous>, transform_indices = @transform_2, window_bounds = array<i64: 1, 20>}, {pipeline_mode = #tpu.pipeline_mode<synchronous>, transform_indices = @transform_3, window_bounds = array<i64: 20, 30>}, {pipeline_mode = #tpu.pipeline_mode<synchronous>, transform_indices = @transform_4, window_bounds = array<i64: 1, 30>}, {pipeline_mode = #tpu.pipeline_mode<synchronous>, transform_indices = @transform_5, window_bounds = array<i64: 15, 10>}, {pipeline_mode = #tpu.pipeline_mode<synchronous>, transform_indices = @transform_6, window_bounds = array<i64: 1, 10>}, {transform_indices = @transform_7, window_bounds = array<i64: 8, 10>}]} {
    %c0 = arith.constant 0 : index
    %c0_0 = arith.constant 0 : index
    %0 = vector.load %arg1[%c0, %c0_0] : memref<8x10xf32, #tpu.memory_space<vmem>>, vector<8x10xf32>
    %c0_1 = arith.constant 0 : index
    %c0_2 = arith.constant 0 : index
    %1 = vector.load %arg2[%c0_1, %c0_2] : memref<10x20xf32, #tpu.memory_space<vmem>>, vector<10x20xf32>
    %cst = arith.constant dense<0.000000e+00> : vector<8x20xf32>
    %2 = tpu.matmul %0, %1, %cst {dimension_numbers = #tpu.dot_dimension_numbers<[1], [0], [0], [1], [0, 0, 1, 1], [], []>} : vector<8x10xf32>, vector<10x20xf32>, vector<8x20xf32> -> vector<8x20xf32>
    %c0_3 = arith.constant 0 : index
    %c0_4 = arith.constant 0 : index
    %3 = vector.load %arg3[%c0_3, %c0_4] : memref<1x20xf32, #tpu.memory_space<vmem>>, vector<1x20xf32>
    %4 = vector.broadcast %3 : vector<1x20xf32> to vector<8x20xf32>
    %5 = arith.addf %2, %4 : vector<8x20xf32>
    %c0_5 = arith.constant 0 : index
    %c0_6 = arith.constant 0 : index
    %6 = vector.load %arg4[%c0_5, %c0_6] : memref<20x30xf32, #tpu.memory_space<vmem>>, vector<20x30xf32>
    %cst_7 = arith.constant dense<0.000000e+00> : vector<8x30xf32>
    %7 = tpu.matmul %5, %6, %cst_7 {dimension_numbers = #tpu.dot_dimension_numbers<[1], [0], [0], [1], [0, 0, 1, 1], [], []>} : vector<8x20xf32>, vector<20x30xf32>, vector<8x30xf32> -> vector<8x30xf32>
    %c0_8 = arith.constant 0 : index
    %c0_9 = arith.constant 0 : index
    %8 = vector.load %arg5[%c0_8, %c0_9] : memref<1x30xf32, #tpu.memory_space<vmem>>, vector<1x30xf32>
    %9 = vector.broadcast %8 : vector<1x30xf32> to vector<8x30xf32>
    %10 = arith.addf %7, %9 : vector<8x30xf32>
    %11 = vector.extract_strided_slice %10 {offsets = [0, 0], sizes = [8, 15], strides = [1, 1]} : vector<8x30xf32> to vector<8x15xf32>
    %cst_10 = arith.constant 0.000000e+00 : f32
    %12 = vector.broadcast %cst_10 : f32 to vector<8x15xf32>
    %13 = arith.maximumf %11, %12 : vector<8x15xf32>
    %14 = vector.extract_strided_slice %10 {offsets = [0, 15], sizes = [8, 15], strides = [1, 1]} : vector<8x30xf32> to vector<8x15xf32>
    %15 = arith.negf %14 : vector<8x15xf32>
    %16 = math.exp %15 : vector<8x15xf32>
    %cst_11 = arith.constant 1.000000e+00 : f32
    %17 = vector.broadcast %cst_11 : f32 to vector<8x15xf32>
    %18 = arith.addf %17, %16 : vector<8x15xf32>
    %19 = arith.divf %17, %18 : vector<8x15xf32>
    %20 = arith.addf %13, %19 : vector<8x15xf32>
    %c0_12 = arith.constant 0 : index
    %c0_13 = arith.constant 0 : index
    %21 = vector.load %arg6[%c0_12, %c0_13] : memref<15x10xf32, #tpu.memory_space<vmem>>, vector<15x10xf32>
    %cst_14 = arith.constant dense<0.000000e+00> : vector<8x10xf32>
    %22 = tpu.matmul %20, %21, %cst_14 {dimension_numbers = #tpu.dot_dimension_numbers<[1], [0], [0], [1], [0, 0, 1, 1], [], []>} : vector<8x15xf32>, vector<15x10xf32>, vector<8x10xf32> -> vector<8x10xf32>
    %c0_15 = arith.constant 0 : index
    %c0_16 = arith.constant 0 : index
    %23 = vector.load %arg7[%c0_15, %c0_16] : memref<1x10xf32, #tpu.memory_space<vmem>>, vector<1x10xf32>
    %24 = vector.broadcast %23 : vector<1x10xf32> to vector<8x10xf32>
    %25 = arith.addf %22, %24 : vector<8x10xf32>
    %c0_17 = arith.constant 0 : index
    %c0_18 = arith.constant 0 : index
    %26 = vector.load %arg8[%c0_17, %c0_18] : memref<8x10xf32, #tpu.memory_space<vmem>>, vector<8x10xf32>
    tpu.vector_store %arg8[%c0_17, %c0_18], %25 {strides = array<i32>} : memref<8x10xf32, #tpu.memory_space<vmem>>, vector<8x10xf32>,
    return
  }
  func.func @transform_0(%arg0: i32) -> (i32, i32) {
    %c0_i32 = arith.constant 0 : i32
    %c0_i32_0 = arith.constant 0 : i32
    return %arg0, %c0_i32 : i32, i32
  }
  func.func @transform_1(%arg0: i32) -> (i32, i32) {
    %c0_i32 = arith.constant 0 : i32
    %c0_i32_0 = arith.constant 0 : i32
    %c0_i32_1 = arith.constant 0 : i32
    return %c0_i32, %c0_i32_0 : i32, i32
  }
  func.func @transform_2(%arg0: i32) -> (i32, i32) {
    %c0_i32 = arith.constant 0 : i32
    %c0_i32_0 = arith.constant 0 : i32
    %c0_i32_1 = arith.constant 0 : i32
    return %c0_i32, %c0_i32_0 : i32, i32
  }
  func.func @transform_3(%arg0: i32) -> (i32, i32) {
    %c0_i32 = arith.constant 0 : i32
    %c0_i32_0 = arith.constant 0 : i32
    %c0_i32_1 = arith.constant 0 : i32
    return %c0_i32, %c0_i32_0 : i32, i32
  }
  func.func @transform_4(%arg0: i32) -> (i32, i32) {
    %c0_i32 = arith.constant 0 : i32
    %c0_i32_0 = arith.constant 0 : i32
    %c0_i32_1 = arith.constant 0 : i32
    return %c0_i32, %c0_i32_0 : i32, i32
  }
  func.func @transform_5(%arg0: i32) -> (i32, i32) {
    %c0_i32 = arith.constant 0 : i32
    %c0_i32_0 = arith.constant 0 : i32
    %c0_i32_1 = arith.constant 0 : i32
    return %c0_i32, %c0_i32_0 : i32, i32
  }
  func.func @transform_6(%arg0: i32) -> (i32, i32) {
    %c0_i32 = arith.constant 0 : i32
    %c0_i32_0 = arith.constant 0 : i32
    %c0_i32_1 = arith.constant 0 : i32
    return %c0_i32, %c0_i32_0 : i32, i32
  }
  func.func @transform_7(%arg0: i32) -> (i32, i32) {
    %c0_i32 = arith.constant 0 : i32
    %c0_i32_0 = arith.constant 0 : i32
    return %arg0, %c0_i32 : i32, i32
  }
}

</mosaic_0001>

<bundles_post_ra>
// kernel: tpu_custom_call.1
= control target key start
LH: loop header
LB: loop body
LE: loop exit
PB: predicated region body
PF: predicated region fallthrough
CT: control target
= control target key end

     0   :  { %12 = vsyncpa [#allocation3], 0  ;;  %s461_s0 = inlined_call_operand.hbm [shape: f32[8,10], index: 0, kind: input, shape index: {}]   ;;  %s462_s1 = inlined_call_operand.hbm [shape: f32[10,20], index: 1, kind: input, shape index: {}]   ;;  %s463_s2 = inlined_call_operand.vmem [shape: f32[1,20], index: 2, kind: input, shape index: {}]   ;;  %s464_s3 = inlined_call_operand.hbm [shape: f32[20,30], index: 3, kind: input, shape index: {}]   ;;  %s465_s4 = inlined_call_operand.vmem [shape: f32[1,30], index: 4, kind: input, shape index: {}]   ;;  %s466_s5 = inlined_call_operand.hbm [shape: f32[15,10], index: 5, kind: input, shape index: {}]   ;;  %s467_s6 = inlined_call_operand.vmem [shape: f32[1,10], index: 6, kind: input, shape index: {}]   ;;  %s468_s7 = inlined_call_operand.hbm [shape: f32[8,10], index: 7, kind: output, shape index: {}]  }
   0x1   :  { %13 = vsyncpa [#allocation6], 0 }
   0x2   :  { %14 = vsyncpa [#allocation9], 0  ;;  %s31_s26 = sshll.u32 %s462_s1, 4  ;;  %s32_s26 = int_to_ptr.hbm [resolvable:$true] %s31_s26 }
   0x3   :  { %15 = vsyncpa [#allocation4], 0  ;;  %s387_s27 = smov [#allocation5]   ;;  %s21_s8 = sshll.u32 %s461_s0, 4  ;;  %s22_s8 = int_to_ptr.hbm [resolvable:$true] %s21_s8 }
   0x4   :  { %s33_s28 = sshll.u32 %s387_s27, 4  ;;  %s388_s9 = smov 128   ;;  %s34_s28 = int_to_ptr.vmem [resolvable:$true] %s33_s28 }
   0x5   :  { %s389_s10 = smov 8   ;;  %s390_s11 = smov [#allocation2]  }
   0x6   :  { %39 = dma.hbm_to_vmem [thread:$0]  %s32_s26, 256, %s34_s28, [#allocation6], %s388_s9, %s388_s9, %s389_s10  }
   0x7   :  { %s23_s12 = sshll.u32 %s390_s11, 4  ;;  %s46_s15 = sshll.u32 %s464_s3, 4  ;;  %s24_s12 = int_to_ptr.vmem [resolvable:$true] %s23_s12  ;;  %s47_s15 = int_to_ptr.hbm [resolvable:$true] %s46_s15 }
   0x8   :  { %26 = dma.hbm_to_vmem [thread:$0]  %s22_s8, 128, %s24_s12, [#allocation3]  }
   0x9   :  { %s61_s17 = sshll.u32 %s466_s5, 4  ;;  %s391_s18 = smov [#allocation7]   ;;  %s62_s17 = int_to_ptr.hbm [resolvable:$true] %s61_s17 }
   0xa   :  { %s48_s19 = sshll.u32 %s391_s18, 4  ;;  %s392_s0 = smov [#allocation8]   ;;  %s49_s19 = int_to_ptr.vmem [resolvable:$true] %s48_s19 }
   0xb   :  { %54 = dma.hbm_to_vmem [thread:$0]  %s47_s15, 384, %s49_s19, [#allocation6], %s388_s9, %s388_s9, %s389_s10  }
   0xc   :  { %s63_s20 = sshll.u32 %s392_s0, 4  ;;  %s64_s20 = int_to_ptr.vmem [resolvable:$true] %s63_s20 }
   0xd   :  { %69 = dma.hbm_to_vmem [thread:$0]  %s62_s17, 256, %s64_s20, [#allocation9], %s388_s9, %s388_s9, %s389_s10  }
   0xe   :  { %379 = dma.done.wait [#allocation3], 128  }
   0xf   :  { %380 = vsyncadd [#allocation3], 4294967168 }
  0x10   :  { %381 = dma.done.wait [#allocation6], 640  }
  0x11   :  { %382 = vsyncadd [#allocation6], 4294966656 }
  0x12   :  { %383 = dma.done.wait [#allocation9], 256  }
  0x13   :  { %384 = vsyncadd [#allocation9], 4294967040  ;;  %vm99_vm0 = vcmask 1041408   ;;  %vm134_vm1 = vcmask 1043456   ;;  %v90_v0 = vld [vmem:[#allocation5 + $0x8] sm:$0x3] }
  0x14   :  { %v89_v1 = vld [vmem:[#allocation5] sm:$0xff]  ;;  %237 = vmatpush.msk.msra.mxu0 %vm99_vm0, %v90_v0  ;;  %v88_v2 = vld [vmem:[#allocation2] sm:$0xff]  ;;  %vm95_vm2 = vcmask 80896   ;;  %v123_v5 = vld [vmem:[#allocation7] sm:$0xff]  ;;  %vm130_vm3 = vcmask 162816   ;;  %vm193_vm8 = vcmask 1046528  }
  0x15   :  { %v125_v3 = vld [vmem:[#allocation7 + $0x10] sm:$0xf]  ;;  %v124_v4 = vld [vmem:[#allocation7 + $0x8] sm:$0xff]  ;;  %v184_v25 = vld [vmem:[#allocation8 + $0x8] sm:$0x7f]  ;;  %vm189_vm9 = vcmask 121856  }
  0x16   :  { %239 = vmatpush.msk.msra.mxu1 %vm134_vm1, %v125_v3  ;;  %118 = vmatpush.msra.mxu0 %v89_v1  ;;  %v252_v6 = vld [vmem:[%s463_s2] ss:$0 sm:$0xff]  ;;  %s393_s2 = smov 113   ;;  %v183_v26 = vld [vmem:[#allocation8] sm:$0xff]  ;;  %s394_s24 = smov [#allocation10]  }
  0x17   :  { %238 = vmatmul.msk.f32.vlgmr.msra.gmra.mxu0 %vm95_vm2, %v88_v2  ;;  %v253_v9 = vld [vmem:[%s465_s4] ss:$0 sm:$0xff]  ;;  %242 = vmatpush.msk.msra.mxu2 %vm193_vm8, %v184_v25  ;;  %s223_s25 = sshll.u32 %s394_s24, 4  ;;  %s225_s28 = sshll.u32 %s468_s7, 4  ;;  %s224_s25 = int_to_ptr.vmem [resolvable:$true] %s223_s25  ;;  %s226_s28 = int_to_ptr.hbm [resolvable:$true] %s225_s28 }
  0x18   :  { %152 = vmatpush.msra.mxu1 %v124_v4  ;;  %v254_v30 = vld [vmem:[%s467_s6] ss:$0 sm:$0xff] }
  0x19   :  { %212 = vmatpush.msra.mxu2 %v183_v26 }
  0x1a   :  { %153 = vmatpush.msra.mxu1 %v123_v5 }
  0x94   :  { %v120_v7 = vpop.f32.mrf.mxu0 }
  0x95   :  { %v121_v8 = vadd.f32 %v252_v6, %v120_v7 }
  0x97   :  { %240 = vmatmul.msk.f32.vlgmr.msra.gmra.mxu1 %vm130_vm3, %v121_v8 }
 0x114   :  { %v155_v10 = vpop.f32.mrf.mxu1 }
 0x115   :  { %v156_v11 = vadd.f32 %v253_v9, %v155_v10 }
 0x117   :  { %v241_v12 = vmul.f32 -1.442695, %v156_v11  ;;  %v158_v27 = vmax.f32 %v156_v11, 0.0 }
 0x119   :  { %255 = vpow2.f32 %v241_v12 }
 0x11f   :  { %v256_v13 = vpop.eup %255 }
 0x120   :  { %v162_v14 = vadd.f32 1.0, %v256_v13 }
 0x122   :  { %257 = vrcp.f32 %v162_v14  ;;  %v174_v18 = vand.u32 2147483648, %v162_v14  ;;  %v172_v20 = vand.u32 2147483647, %v162_v14  ;;  %vm168_vm5 = vweird.f32 %v162_v14 }
 0x124   :  { %v175_v22 = vor.u32 1.1754944e-38, %v174_v18  ;;  %vm173_vm7 = vcmp.eq.f32.partialorder %v172_v20, 8.507059e+37 }
 0x128   :  { %v258_v15 = vpop.eup %257 }
 0x129   :  { %v164_v16 = vmul.f32 %v258_v15, %v162_v14  ;;  %vm169_vm4 = vweird.f32 %v258_v15 }
 0x12a   :  { %vm170_vm6 = vmor %vm168_vm5, %vm169_vm4 }
 0x12b   :  { %v165_v17 = vsub.f32 1.0, %v164_v16 }
 0x12d   :  { %v166_v19 = vmul.f32 %v258_v15, %v165_v17 }
 0x12f   :  { %v167_v21 = vadd.f32 %v258_v15, %v166_v19 }
 0x131   :  { %v171_v23 = vsel %vm170_vm6, %v258_v15, %v167_v21 }
 0x132   :  { %v176_v24 = vsel %vm173_vm7, %v175_v22, %v171_v23 }
 0x133   :  { %179 = vrot.lane.b32.xlu0 %v176_v24, %s393_s2 }
 0x1a5   :  { %v180_v28 = vpop.permute.xlu0 %179 }
 0x1a6   :  { %v182_v29 = vadd.f32 %v180_v28, %v158_v27 }
 0x1a8   :  { %243 = vmatmul.msk.f32.vlgmr.msra.gmra.mxu2 %vm189_vm9, %v182_v29 }
 0x22b   :  { %v214_v31 = vpop.f32.mrf.mxu2 }
 0x22c   :  { %v215_v32 = vadd.f32 %v254_v30, %v214_v31 }
 0x22e   :  { %217 = vst.msk [vmem:[#allocation10] sm:$0xff] %vm95_vm2, %v215_v32 }
 0x22f   :  { %228 = dma.vmem_to_hbm [thread:$0]  %s224_s25, 128, %s226_s28, [#allocation4]  }
 0x230   :  { %385 = dma.done.wait [#allocation4], 128  }
 0x231   :  { %386 = vsyncadd [#allocation4], 4294967168 }
 0x232   :  { %233 = vsyncpa [#allocation3], 1 }
 0x233   :  { %234 = vsyncpa [#allocation6], 1 }
 0x234   :  { %235 = vsyncpa [#allocation9], 1 }
 0x235   :  { %236 = vsyncpa [#allocation4], 1 }

</bundles_post_ra>
